<compile_context>
chip_gen: v7x
topology: tpu7x:2x2x1
jax: 0.10.0
libtpu: 0.0.40
codegen_flags: <defaults>
</compile_context>

<pallas_src>
import functools

import jax
import jax.numpy as jnp
from jax.experimental import pallas as pl
from jax.experimental.pallas import tpu as pltpu


_VMEM_LIMIT_BYTES = 32 * 1024 * 1024   # explicit scoped-VMEM limit; safe on v5e/v6e/v7x
_TILE_VMEM_BUDGET = 8 * 1024 * 1024    # double-buffered working-set target per call
_TARGET_LANES = 8192                   # >=512 lanes already ~85% of HBM roofline


# ---------------------------------------------------------------------------
# helpers
# ---------------------------------------------------------------------------

def _flatten(x):
    """(N,1,H,W) or (N,H,W) -> (N, H*W). Native dtype preserved (no f32 upcast)."""
    if x.ndim == 4:
        x = jnp.squeeze(x, axis=1)
    n = x.shape[0]
    return x.reshape(n, -1)


def _tile_plan(n_rows, lanes, pred_itemsizes, label_itemsize):
    """Pick (tile_lanes, n_outer, n_inner) for the (outer, inner) reduction grid."""
    # bytes streamed per lane of tile, x2 for double-buffered pipelining
    bytes_per_lane = 2 * n_rows * (sum(pred_itemsizes) + label_itemsize)
    max_lanes = max(128, min(_TARGET_LANES, _TILE_VMEM_BUDGET // max(1, bytes_per_lane)))
    max_lanes = (max_lanes // 128) * 128
    if lanes <= max_lanes or lanes % 128 != 0:
        tl = lanes                     # single full-width tile (also covers non-128 L)
    else:
        tl = 128
        for t in range(max_lanes, 127, -128):
            if lanes % t == 0:
                tl = t
                break
    n_tiles = lanes // tl
    # 2-way "parallel" outer split when there is enough work (v7x: 2 TensorCores)
    n_outer = 2 if (n_tiles >= 4 and n_tiles % 2 == 0) else 1
    return tl, n_outer, n_tiles // n_outer


# ---------------------------------------------------------------------------
# Pallas kernels (hot path: elementwise BCE / sigmoid + tiled reductions)
# ---------------------------------------------------------------------------

def _make_bce_kernel(n_pred):
    """Fused BCE-with-logits partial sums for `n_pred` predictions sharing one label."""

    def kernel(*refs):
        pred_refs = refs[:n_pred]              # each (N, TL), native dtype
        label_ref = refs[n_pred]               # (N, TL), int-like or float
        out_ref = refs[n_pred + 1]             # (n_pred, 1) f32 (per-outer block)
        acc_ref = refs[n_pred + 2]             # (n_pred, 1) f32 VMEM accumulator
        inner = pl.program_id(1)

        @pl.when(inner == 0)
        def _init():
            acc_ref[...] = jnp.zeros_like(acc_ref)

        z = label_ref[...].astype(jnp.float32)                      # (N, TL)
        for p in range(n_pred):                                     # static unroll (<=3)
            x = pred_refs[p][...].astype(jnp.float32)               # (N, TL)
            # numerically stable: max(x,0) - x*z + log1p(exp(-|x|))
            loss = jnp.maximum(x, 0.0) - x * z + jnp.log1p(jnp.exp(-jnp.abs(x)))
            acc_ref[p:p + 1, :] += jnp.sum(loss, axis=(0, 1), keepdims=True)

        @pl.when(inner == pl.num_programs(1) - 1)
        def _done():
            out_ref[...] = acc_ref[...]

    return kernel


def _make_dice_kernel(n_pred):
    """Fused per-sample dice partial sums (inter, pred_sum, label_sum) for
    `n_pred` predictions sharing one label; single packed output."""

    def kernel(*refs):
        pred_refs = refs[:n_pred]              # each (N, TL), native dtype
        label_ref = refs[n_pred]               # (N, TL)
        out_ref = refs[n_pred + 1]             # (n_pred, N, 3) f32 (per-outer block)
        acc_ref = refs[n_pred + 2]             # (n_pred, N, 3) f32 VMEM accumulator
        inner = pl.program_id(1)

        @pl.when(inner == 0)
        def _init():
            acc_ref[...] = jnp.zeros_like(acc_ref)

        z = label_ref[...].astype(jnp.float32)                      # (N, TL)
        lsum = jnp.sum(z, axis=1, keepdims=True)                    # (N, 1)
        for p in range(n_pred):                                     # static unroll (<=3)
            s = jax.nn.sigmoid(pred_refs[p][...].astype(jnp.float32))   # (N, TL)
            inter = jnp.sum(s * z, axis=1, keepdims=True)               # (N, 1)
            psum = jnp.sum(s, axis=1, keepdims=True)                    # (N, 1)
            acc_ref[p] += jnp.concatenate([inter, psum, lsum], axis=1)  # (N, 3)

        @pl.when(inner == pl.num_programs(1) - 1)
        def _done():
            out_ref[...] = acc_ref[...]

    return kernel


# ---------------------------------------------------------------------------
# Wrappers around pallas_call
# ---------------------------------------------------------------------------

def _common_pallas_args(n, tl, n_outer, n_inner, n_pred):
    data_map = lambda o, i: (0, o * n_inner + i)
    in_specs = [pl.BlockSpec((n, tl), data_map) for _ in range(n_pred + 1)]  # preds + label
    compiler_params = pltpu.CompilerParams(
        dimension_semantics=("parallel", "arbitrary"),
        vmem_limit_bytes=_VMEM_LIMIT_BYTES)
    return in_specs, compiler_params


def bce_with_logits_losses(preds, label):
    """mmseg CrossEntropyLoss(use_sigmoid=True, reduction='mean') for every pred in
    `preds`, all sharing `label`.  Returns a list of scalar losses (one per pred)."""
    preds2 = [_flatten(p) for p in preds]
    l2 = _flatten(label)
    n_pred = len(preds2)
    n, lanes = preds2[0].shape
    tl, n_outer, n_inner = _tile_plan(
        n, lanes, [p.dtype.itemsize for p in preds2], l2.dtype.itemsize)
    in_specs, cparams = _common_pallas_args(n, tl, n_outer, n_inner, n_pred)

    sums = pl.pallas_call(
        _make_bce_kernel(n_pred),
        out_shape=jax.ShapeDtypeStruct((n_outer, n_pred, 1), jnp.float32),
        grid=(n_outer, n_inner),
        in_specs=in_specs,
        out_specs=pl.BlockSpec((None, n_pred, 1), lambda o, i: (o, 0, 0)),
        scratch_shapes=[pltpu.VMEM((n_pred, 1), jnp.float32)],
        compiler_params=cparams,
    )(*preds2, l2)

    total = jnp.sum(sums, axis=0)[:, 0]                       # (n_pred,)
    denom = jnp.float32(n * lanes)
    # TODO(synk): mmseg ignore_index=255 valid-pixel masking is not replicated;
    # the mean divides by all N*H*W pixels (binary aux tasks without ignore).
    return [total[p] / denom for p in range(n_pred)]


def binary_dice_losses(preds, label, smooth=1e-5):
    """BinaryLoss(loss_type='dice', smooth): sigmoid + per-sample dice,
    loss = 1 - mean_n(dice).  One scalar per pred; label streamed once."""
    preds2 = [_flatten(p) for p in preds]
    l2 = _flatten(label)
    n_pred = len(preds2)
    n, lanes = preds2[0].shape
    tl, n_outer, n_inner = _tile_plan(
        n, lanes, [p.dtype.itemsize for p in preds2], l2.dtype.itemsize)
    in_specs, cparams = _common_pallas_args(n, tl, n_outer, n_inner, n_pred)

    packed = pl.pallas_call(
        _make_dice_kernel(n_pred),
        out_shape=jax.ShapeDtypeStruct((n_outer, n_pred, n, 3), jnp.float32),
        grid=(n_outer, n_inner),
        in_specs=in_specs,
        out_specs=pl.BlockSpec((None, n_pred, n, 3), lambda o, i: (o, 0, 0, 0)),
        scratch_shapes=[pltpu.VMEM((n_pred, n, 3), jnp.float32)],
        compiler_params=cparams,
    )(*preds2, l2)

    sums = jnp.sum(packed, axis=0)                            # (n_pred, N, 3)
    inter, psum, lsum = sums[..., 0], sums[..., 1], sums[..., 2]
    # TODO(synk): this uses the sum(p)+sum(l) dice denominator (as validated
    # previously); some BinaryLoss variants use sum(p**2)+sum(l**2).
    dice = (2.0 * inter + smooth) / (psum + lsum + smooth)    # (n_pred, N)
    losses = 1.0 - jnp.mean(dice, axis=1)
    return [losses[p] for p in range(n_pred)]


# ---------------------------------------------------------------------------
# Module-equivalent forward
# ---------------------------------------------------------------------------

class MultiGenAuxLoss:
    """JAX/Pallas port of mmseg MultiGenAuxLoss forward (binary two-task config)."""

    def __init__(self, loss_name='loss_gen_task', loss_weight=1.0, smooth=1e-5):
        self._loss_name = loss_name
        self.loss_weight = loss_weight     # kept for parity; unused in forward (matches ref)
        self.smooth = smooth
        # loss_decode[0]: CrossEntropyLoss(use_sigmoid=True, loss_weight=1.0)
        # loss_decode[1]: BinaryLoss(dice, smooth=1e-5, loss_weight=1.0)
        self._group_loss = [
            bce_with_logits_losses,
            functools.partial(binary_dice_losses, smooth=smooth),
        ]

    def __call__(self, outputs_dict):
        loss = {}
        kd_loss = {}
        num = len(outputs_dict['aux_pred'])
        with_kd = outputs_dict['with_kd']
        with_aux = outputs_dict['with_auxiliary_head']
        for i in range(num):
            label = jnp.squeeze(outputs_dict['aux_label'][i], axis=1)
            preds = [outputs_dict['aux_pred'][i]]
            if with_aux:
                preds.append(outputs_dict['aux_source_seg'][i])
            kd_key = None
            if with_kd and i == 0:                      # kd_task_1 shares label/loss of task 1
                preds.append(outputs_dict['kd_task2_pred'])
                kd_key = 'loss_kd_task_1'
            elif with_kd and i == 1 and 'kd_task1_pred' in outputs_dict:
                preds.append(outputs_dict['kd_task1_pred'])
                kd_key = 'loss_kd_task_2'
            # One fused pallas_call per label-sharing group.
            vals = self._group_loss[i](preds, label)
            j = 0
            loss[f'loss_gen_task_{i + 1}'] = vals[j]
            j += 1
            if with_aux:
                loss[f'loss_gen_task_aux_{i + 1}'] = 0.1 * vals[j]
                j += 1
            if kd_key is not None:
                kd_loss[kd_key] = vals[j]
                j += 1
        loss.update(kd_loss)   # kd entries last, matching reference key ordering
        return loss

    def loss_name(self):
        return self._loss_name


# ---------------------------------------------------------------------------
# Pure-JAX references (for sanity checking the demo)
# ---------------------------------------------------------------------------

def _ref_bce(pred, label):
    x = _flatten(pred).astype(jnp.float32)
    z = _flatten(label).astype(jnp.float32)
    l = jnp.maximum(x, 0.0) - x * z + jnp.log1p(jnp.exp(-jnp.abs(x)))
    return jnp.mean(l)


def _ref_dice(pred, label, smooth=1e-5):
    p = jax.nn.sigmoid(_flatten(pred).astype(jnp.float32))
    z = _flatten(label).astype(jnp.float32)
    dice = (2.0 * jnp.sum(p * z, 1) + smooth) / (jnp.sum(p, 1) + jnp.sum(z, 1) + smooth)
    return 1.0 - jnp.mean(dice)


# ---------------------------------------------------------------------------
# Demo
# ---------------------------------------------------------------------------

if __name__ == "__main__":
    key = jax.random.PRNGKey(0)
    N, C, H, W = 2, 1, 16, 16          # binary aux tasks: single-channel logits
    ks = jax.random.split(key, 8)

    # Narrow input dtypes: preds f32/bf16, labels int8 -- the kernels cast on-tile.
    aux_pred = [jax.random.normal(ks[0], (N, C, H, W), jnp.float32),
                jax.random.normal(ks[1], (N, C, H, W), jnp.float32)]
    aux_label = [(jax.random.uniform(ks[2], (N, 1, H, W)) > 0.5).astype(jnp.int8),
                 (jax.random.uniform(ks[3], (N, 1, H, W)) > 0.5).astype(jnp.int8)]
    aux_source_seg = [jax.random.normal(ks[4], (N, C, H, W), jnp.float32),
                      jax.random.normal(ks[5], (N, C, H, W), jnp.float32)]
    kd_task2_pred = jax.random.normal(ks[6], (N, C, H, W), jnp.float32).astype(jnp.bfloat16)
    kd_task1_pred = jax.random.normal(ks[7], (N, C, H, W), jnp.float32).astype(jnp.bfloat16)

    outputs_dict = {
        'aux_pred': aux_pred,
        'aux_label': aux_label,
        'aux_source_seg': aux_source_seg,
        'with_auxiliary_head': True,
        'with_kd': True,
        'kd_task2_pred': kd_task2_pred,
        'kd_task1_pred': kd_task1_pred,
    }

    module = MultiGenAuxLoss()
    losses = module(outputs_dict)
    jax.block_until_ready(losses)

    # Sanity check against a pure-JAX reference.
    expected = {
        'loss_gen_task_1': _ref_bce(aux_pred[0], aux_label[0]),
        'loss_gen_task_aux_1': 0.1 * _ref_bce(aux_source_seg[0], aux_label[0]),
        'loss_gen_task_2': _ref_dice(aux_pred[1], aux_label[1]),
        'loss_gen_task_aux_2': 0.1 * _ref_dice(aux_source_seg[1], aux_label[1]),
        'loss_kd_task_1': _ref_bce(kd_task2_pred, aux_label[0]),
        'loss_kd_task_2': _ref_dice(kd_task1_pred, aux_label[1]),
    }
    for k, v in expected.items():
        assert k in losses, f"missing key {k}"
        assert jnp.allclose(losses[k], v, rtol=1e-4, atol=1e-5), (k, losses[k], v)

    print("KERNEL_OK")
</pallas_src>

<mosaic_0001>
module attributes {stable_mosaic.version = 11 : i64} {
  func.func @kernel(%arg0: i32, %arg1: i32, %arg2: memref<2x256xf32, #tpu.memory_space<vmem>>, %arg3: memref<2x256xf32, #tpu.memory_space<vmem>>, %arg4: memref<2x256xbf16, #tpu.memory_space<vmem>>, %arg5: memref<2x256xi8, #tpu.memory_space<vmem>>, %arg6: memref<1x3x1xf32, #tpu.memory_space<vmem>>, %arg7: memref<3x1xf32, #tpu.memory_space<vmem>>) attributes {dimension_semantics = [#tpu.dimension_semantics<parallel>, #tpu.dimension_semantics<arbitrary>], iteration_bounds = array<i64: 1, 1>, scalar_prefetch = 0 : i64, scratch_operands = 1 : i64, tpu.core_type = #tpu.core_type<tc>, window_params = [{transform_indices = @transform_0, window_bounds = array<i64: 2, 256>}, {transform_indices = @transform_1, window_bounds = array<i64: 2, 256>}, {transform_indices = @transform_2, window_bounds = array<i64: 2, 256>}, {transform_indices = @transform_3, window_bounds = array<i64: 2, 256>}, {transform_indices = @transform_4, window_bounds = array<i64: 1, 3, 1>}]} {
    %c0_i32 = arith.constant 0 : i32
    %0 = arith.cmpi eq, %arg1, %c0_i32 : i32
    %1 = arith.extui %0 : i1 to i32
    %c0_i32_0 = arith.constant 0 : i32
    %2 = arith.cmpi ne, %1, %c0_i32_0 : i32
    scf.if %2 {
      %cst_28 = arith.constant 0.000000e+00 : f32
      %66 = vector.broadcast %cst_28 : f32 to vector<3x1xf32>
      %c0_29 = arith.constant 0 : index
      %c0_30 = arith.constant 0 : index
      %67 = vector.load %arg7[%c0_29, %c0_30] : memref<3x1xf32, #tpu.memory_space<vmem>>, vector<3x1xf32>
      tpu.vector_store %arg7[%c0_29, %c0_30], %66 {strides = array<i32>} : memref<3x1xf32, #tpu.memory_space<vmem>>, vector<3x1xf32>,
    } else {
    }
    %c0 = arith.constant 0 : index
    %c0_1 = arith.constant 0 : index
    %3 = vector.load %arg5[%c0, %c0_1] : memref<2x256xi8, #tpu.memory_space<vmem>>, vector<2x256xi8>
    %4 = arith.sitofp %3 : vector<2x256xi8> to vector<2x256xf32>
    %c0_2 = arith.constant 0 : index
    %c0_3 = arith.constant 0 : index
    %5 = vector.load %arg2[%c0_2, %c0_3] : memref<2x256xf32, #tpu.memory_space<vmem>>, vector<2x256xf32>
    %cst = arith.constant 0.000000e+00 : f32
    %6 = vector.broadcast %cst : f32 to vector<2x256xf32>
    %7 = arith.maximumf %5, %6 : vector<2x256xf32>
    %8 = arith.mulf %5, %4 : vector<2x256xf32>
    %9 = arith.subf %7, %8 : vector<2x256xf32>
    %10 = math.absf %5 : vector<2x256xf32>
    %cst_4 = arith.constant 0.000000e+00 : f32
    %11 = vector.broadcast %cst_4 : f32 to vector<2x256xf32>
    %12 = arith.subf %11, %10 : vector<2x256xf32>
    %13 = math.exp %12 : vector<2x256xf32>
    %14 = math.log1p %13 : vector<2x256xf32>
    %15 = arith.addf %9, %14 : vector<2x256xf32>
    %c0_5 = arith.constant 0 : index
    %c0_6 = arith.constant 0 : index
    %16 = vector.load %arg7[%c0_5, %c0_6] : memref<3x1xf32, #tpu.memory_space<vmem>>, vector<1x1xf32>
    %17 = vector.shape_cast %15 : vector<2x256xf32> to vector<1x2x256xf32>
    %cst_7 = arith.constant dense<0.000000e+00> : vector<1xf32>
    %18 = vector.multi_reduction <add>, %17, %cst_7 [1, 2] : vector<1x2x256xf32> to vector<1xf32>
    %19 = vector.shape_cast %18 : vector<1xf32> to vector<1x1x1xf32>
    %20 = vector.extract %19[0, 0, 0] : f32 from vector<1x1x1xf32>
    %21 = vector.broadcast %20 : f32 to vector<1x1xf32>
    %22 = arith.addf %16, %21 : vector<1x1xf32>
    %c0_8 = arith.constant 0 : index
    %c0_9 = arith.constant 0 : index
    %23 = vector.load %arg7[%c0_8, %c0_9] : memref<3x1xf32, #tpu.memory_space<vmem>>, vector<1x1xf32>
    tpu.vector_store %arg7[%c0_8, %c0_9], %22 {strides = array<i32>} : memref<3x1xf32, #tpu.memory_space<vmem>>, vector<1x1xf32>,
    %c0_10 = arith.constant 0 : index
    %c0_11 = arith.constant 0 : index
    %24 = vector.load %arg3[%c0_10, %c0_11] : memref<2x256xf32, #tpu.memory_space<vmem>>, vector<2x256xf32>
    %cst_12 = arith.constant 0.000000e+00 : f32
    %25 = vector.broadcast %cst_12 : f32 to vector<2x256xf32>
    %26 = arith.maximumf %24, %25 : vector<2x256xf32>
    %27 = arith.mulf %24, %4 : vector<2x256xf32>
    %28 = arith.subf %26, %27 : vector<2x256xf32>
    %29 = math.absf %24 : vector<2x256xf32>
    %cst_13 = arith.constant 0.000000e+00 : f32
    %30 = vector.broadcast %cst_13 : f32 to vector<2x256xf32>
    %31 = arith.subf %30, %29 : vector<2x256xf32>
    %32 = math.exp %31 : vector<2x256xf32>
    %33 = math.log1p %32 : vector<2x256xf32>
    %34 = arith.addf %28, %33 : vector<2x256xf32>
    %c1 = arith.constant 1 : index
    %c0_14 = arith.constant 0 : index
    %35 = vector.load %arg7[%c1, %c0_14] : memref<3x1xf32, #tpu.memory_space<vmem>>, vector<1x1xf32>
    %36 = vector.shape_cast %34 : vector<2x256xf32> to vector<1x2x256xf32>
    %cst_15 = arith.constant dense<0.000000e+00> : vector<1xf32>
    %37 = vector.multi_reduction <add>, %36, %cst_15 [1, 2] : vector<1x2x256xf32> to vector<1xf32>
    %38 = vector.shape_cast %37 : vector<1xf32> to vector<1x1x1xf32>
    %39 = vector.extract %38[0, 0, 0] : f32 from vector<1x1x1xf32>
    %40 = vector.broadcast %39 : f32 to vector<1x1xf32>
    %41 = arith.addf %35, %40 : vector<1x1xf32>
    %c1_16 = arith.constant 1 : index
    %c0_17 = arith.constant 0 : index
    %42 = vector.load %arg7[%c1_16, %c0_17] : memref<3x1xf32, #tpu.memory_space<vmem>>, vector<1x1xf32>
    tpu.vector_store %arg7[%c1_16, %c0_17], %41 {strides = array<i32>} : memref<3x1xf32, #tpu.memory_space<vmem>>, vector<1x1xf32>,
    %c0_18 = arith.constant 0 : index
    %c0_19 = arith.constant 0 : index
    %43 = vector.load %arg4[%c0_18, %c0_19] : memref<2x256xbf16, #tpu.memory_space<vmem>>, vector<2x256xbf16>
    %44 = arith.extf %43 : vector<2x256xbf16> to vector<2x256xf32>
    %cst_20 = arith.constant 0.000000e+00 : f32
    %45 = vector.broadcast %cst_20 : f32 to vector<2x256xf32>
    %46 = arith.maximumf %44, %45 : vector<2x256xf32>
    %47 = arith.mulf %44, %4 : vector<2x256xf32>
    %48 = arith.subf %46, %47 : vector<2x256xf32>
    %49 = math.absf %44 : vector<2x256xf32>
    %cst_21 = arith.constant 0.000000e+00 : f32
    %50 = vector.broadcast %cst_21 : f32 to vector<2x256xf32>
    %51 = arith.subf %50, %49 : vector<2x256xf32>
    %52 = math.exp %51 : vector<2x256xf32>
    %53 = math.log1p %52 : vector<2x256xf32>
    %54 = arith.addf %48, %53 : vector<2x256xf32>
    %c2 = arith.constant 2 : index
    %c0_22 = arith.constant 0 : index
    %55 = vector.load %arg7[%c2, %c0_22] : memref<3x1xf32, #tpu.memory_space<vmem>>, vector<1x1xf32>
    %56 = vector.shape_cast %54 : vector<2x256xf32> to vector<1x2x256xf32>
    %cst_23 = arith.constant dense<0.000000e+00> : vector<1xf32>
    %57 = vector.multi_reduction <add>, %56, %cst_23 [1, 2] : vector<1x2x256xf32> to vector<1xf32>
    %58 = vector.shape_cast %57 : vector<1xf32> to vector<1x1x1xf32>
    %59 = vector.extract %58[0, 0, 0] : f32 from vector<1x1x1xf32>
    %60 = vector.broadcast %59 : f32 to vector<1x1xf32>
    %61 = arith.addf %55, %60 : vector<1x1xf32>
    %c2_24 = arith.constant 2 : index
    %c0_25 = arith.constant 0 : index
    %62 = vector.load %arg7[%c2_24, %c0_25] : memref<3x1xf32, #tpu.memory_space<vmem>>, vector<1x1xf32>
    tpu.vector_store %arg7[%c2_24, %c0_25], %61 {strides = array<i32>} : memref<3x1xf32, #tpu.memory_space<vmem>>, vector<1x1xf32>,
    %c0_i32_26 = arith.constant 0 : i32
    %63 = arith.cmpi eq, %arg1, %c0_i32_26 : i32
    %64 = arith.extui %63 : i1 to i32
    %c0_i32_27 = arith.constant 0 : i32
    %65 = arith.cmpi ne, %64, %c0_i32_27 : i32
    scf.if %65 {
      %c0_28 = arith.constant 0 : index
      %c0_29 = arith.constant 0 : index
      %66 = vector.load %arg7[%c0_28, %c0_29] : memref<3x1xf32, #tpu.memory_space<vmem>>, vector<3x1xf32>
      %c0_30 = arith.constant 0 : index
      %c0_31 = arith.constant 0 : index
      %c0_32 = arith.constant 0 : index
      %67 = vector.load %arg6[%c0_30, %c0_31, %c0_32] : memref<1x3x1xf32, #tpu.memory_space<vmem>>, vector<1x3x1xf32>
      %68 = vector.shape_cast %67 : vector<1x3x1xf32> to vector<3x1xf32>
      %69 = vector.shape_cast %66 : vector<3x1xf32> to vector<1x3x1xf32>
      tpu.vector_store %arg6[%c0_30, %c0_31, %c0_32], %69 {strides = array<i32>} : memref<1x3x1xf32, #tpu.memory_space<vmem>>, vector<1x3x1xf32>,
    } else {
    }
    return
  }
  func.func @transform_0(%arg0: i32, %arg1: i32) -> (i32, i32) {
    %c1_i32 = arith.constant 1 : i32
    %0 = arith.muli %arg0, %c1_i32 : i32
    %1 = arith.addi %0, %arg1 : i32
    %c0_i32 = arith.constant 0 : i32
    %c0_i32_0 = arith.constant 0 : i32
    return %c0_i32, %1 : i32, i32
  }
  func.func @transform_1(%arg0: i32, %arg1: i32) -> (i32, i32) {
    %c1_i32 = arith.constant 1 : i32
    %0 = arith.muli %arg0, %c1_i32 : i32
    %1 = arith.addi %0, %arg1 : i32
    %c0_i32 = arith.constant 0 : i32
    %c0_i32_0 = arith.constant 0 : i32
    return %c0_i32, %1 : i32, i32
  }
  func.func @transform_2(%arg0: i32, %arg1: i32) -> (i32, i32) {
    %c1_i32 = arith.constant 1 : i32
    %0 = arith.muli %arg0, %c1_i32 : i32
    %1 = arith.addi %0, %arg1 : i32
    %c0_i32 = arith.constant 0 : i32
    %c0_i32_0 = arith.constant 0 : i32
    return %c0_i32, %1 : i32, i32
  }
  func.func @transform_3(%arg0: i32, %arg1: i32) -> (i32, i32) {
    %c1_i32 = arith.constant 1 : i32
    %0 = arith.muli %arg0, %c1_i32 : i32
    %1 = arith.addi %0, %arg1 : i32
    %c0_i32 = arith.constant 0 : i32
    %c0_i32_0 = arith.constant 0 : i32
    return %c0_i32, %1 : i32, i32
  }
  func.func @transform_4(%arg0: i32, %arg1: i32) -> (i32, i32, i32) {
    %c0_i32 = arith.constant 0 : i32
    %c0_i32_0 = arith.constant 0 : i32
    %c0_i32_1 = arith.constant 0 : i32
    return %arg0, %c0_i32, %c0_i32_0 : i32, i32, i32
  }
}

</mosaic_0001>

<bundles_post_ra>
// kernel: tpu_custom_call.1
= control target key start
LH: loop header
LB: loop body
LE: loop exit
PB: predicated region body
PF: predicated region fallthrough
CT: control target
= control target key end

     0   :  { %9 = vsyncpa [#allocation4], 0  ;;  %s405_s0 = inlined_call_operand.hbm [shape: f32[2,256], index: 0, kind: input, shape index: {}]   ;;  %s406_s1 = inlined_call_operand.hbm [shape: f32[2,256], index: 1, kind: input, shape index: {}]   ;;  %s407_s2 = inlined_call_operand.vmem [shape: bf16[2,256], index: 2, kind: input, shape index: {}]   ;;  %s408_s3 = inlined_call_operand.vmem [shape: s8[2,256], index: 3, kind: input, shape index: {}]   ;;  %s409_s4 = inlined_call_operand.vmem [shape: f32[1,3,1], index: 4, kind: output, shape index: {}]  }
   0x1   :  { %10 = vsyncpa [#allocation6], 0  ;;  %s335_s15 = smov [#allocation3]   ;;  %s336_s17 = smov [#allocation5]  }
   0x2   :  { %s21_s16 = sshll.u32 %s335_s15, 4  ;;  %s35_s18 = sshll.u32 %s336_s17, 4  ;;  %s22_s16 = int_to_ptr.vmem [resolvable:$true] %s21_s16  ;;  %s36_s18 = int_to_ptr.vmem [resolvable:$true] %s35_s18 }
   0x3   :  { %s287_s21 = scalar_lea.hbm %s405_s0, 64 }
   0x4   :  { %p288_p0 = scmp.ne.s32.totalorder %s405_s0, %s287_s21  ;;  %p291_p1 = scmp.lt.u32.totalorder %s287_s21, %s405_s0 }
   0x6   :  { %p293_p2 = pnand %p291_p1, %p288_p0 }
   0x8   :  { %296 = shalt.err (!%p293_p2)
}
   0x9   :  { %s297_s26 = scalar_lea.vmem %s22_s16, 64  ;;  %p302_p4 = scmp.lt.s32.totalorder %s22_s16, %s22_s16 }
   0xa   :  { %p298_p3 = scmp.ne.s32.totalorder %s22_s16, %s297_s26  ;;  %p303_p5 = scmp.lt.s32.totalorder %s297_s26, %s297_s26 }
   0xc   :  { %p304_p6 = por %p303_p5, %p302_p4 }
   0xe   :  { %p305_p7 = pnand %p304_p6, %p298_p3 }
  0x10   :  { %308 = shalt.err (!%p305_p7)
}
  0x11   :  { %24 = dma.hbm_to_vmem [thread:$0]  %s405_s0, 64, %s22_s16, [#allocation4]  }
  0x12   :  { %s309_s5 = scalar_lea.hbm %s406_s1, 64 }
  0x13   :  { %p310_p8 = scmp.ne.s32.totalorder %s406_s1, %s309_s5  ;;  %p313_p9 = scmp.lt.u32.totalorder %s309_s5, %s406_s1 }
  0x15   :  { %p315_p10 = pnand %p313_p9, %p310_p8 }
  0x17   :  { %318 = shalt.err (!%p315_p10)
}
  0x18   :  { %s319_s10 = scalar_lea.vmem %s36_s18, 64  ;;  %p324_p12 = scmp.lt.s32.totalorder %s36_s18, %s36_s18 }
  0x19   :  { %p320_p11 = scmp.ne.s32.totalorder %s36_s18, %s319_s10  ;;  %p325_p13 = scmp.lt.s32.totalorder %s319_s10, %s319_s10 }
  0x1b   :  { %p326_p0 = por %p325_p13, %p324_p12 }
  0x1d   :  { %p327_p1 = pnand %p326_p0, %p320_p11 }
  0x1f   :  { %330 = shalt.err (!%p327_p1)
}
  0x20   :  { %38 = dma.hbm_to_vmem [thread:$0]  %s406_s1, 64, %s36_s18, [#allocation6]  }
  0x21   :  { %331 = dma.done.wait [#allocation4], 64  }
  0x22   :  { %332 = vsyncadd [#allocation4], 4294967232 }
  0x23   :  { %333 = dma.done.wait [#allocation6], 64  }
  0x24   :  { %334 = vsyncadd [#allocation6], 4294967232  ;;  %v100_v0 = vld [vmem:[#allocation3] sm:$0xf]  ;;  %v201_v1 = vld [vmem:[%s407_s2] sm:$0x3]  ;;  %v106_v15 = vlaneseq }
  0x25   :  { %v113_v2 = vand.u32 2147483647, %v100_v0  ;;  %v202_v3 = vunpack.c.l.bf16 %v201_v1  ;;  %v156_v4 = vld [vmem:[#allocation5] sm:$0xf]  ;;  %v337_v13 = vmov 1983009808  }
  0x26   :  { %v160_v5 = vand.u32 2147483647, %v156_v4  ;;  %v104_v14 = vunpack.c.l.s4 %v337_v13  ;;  %v97_v16 = vld [vmem:[%s408_s3] sm:$0x3]  ;;  %v107_v19 = vshrl.u32 %v106_v15, 7  ;;  %v101_v33 = vmax.f32 %v100_v0, 0.0 }
  0x27   :  { %v114_v6 = vsub.f32 0.0, %v113_v2  ;;  %v206_v7 = vand.u32 2147483647, %v202_v3  ;;  %v98_v17 = vunpack.c.0.s8 %v97_v16  ;;  %v157_v38 = vmax.f32 %v156_v4, 0.0 }
  0x28   :  { %v161_v8 = vsub.f32 0.0, %v160_v5  ;;  %v105_v18 = vunpack.c.0.s8 %v104_v14  ;;  %v203_v41 = vmax.f32 %v202_v3, 0.0  ;;  %vm139_vm3 = vcmask 1041408  }
  0x29   :  { %v115_v9 = vmul.f32 1.442695, %v114_v6  ;;  %v207_v10 = vsub.f32 0.0, %v206_v7  ;;  %v99_v22 = vcvt.s32.f32 %v98_v17  ;;  %vm95_vm4 = vcmask 2048  }
  0x2a   :  { %v162_v11 = vmul.f32 1.442695, %v161_v8  ;;  %v108_v23 = vsub.s32 %v105_v18, %v107_v19  ;;  %v338_v13 = vmov 0.0   ;;  %vm154_vm5 = vcmask 0  }
  0x2b   :  { %275 = vpow2.f32 %v115_v9  ;;  %v208_v12 = vmul.f32 1.442695, %v207_v10  ;;  %96 = vst.msk [vmem:[#allocation2] sm:$0x7] %vm95_vm4, %v338_v13 }
  0x2c   :  { %277 = vpow2.f32 %v162_v11  ;;  %v109_v29 = vrot.slane %v99_v22, %v108_v23 }
  0x2d   :  { %279 = vpow2.f32 %v208_v12 }
  0x2e   :  { %v111_v34 = vmul.f32 %v109_v29, %v100_v0  ;;  %v158_v39 = vmul.f32 %v156_v4, %v109_v29  ;;  %v204_v42 = vmul.f32 %v202_v3, %v109_v29 }
  0x30   :  { %v112_v46 = vsub.f32 %v101_v33, %v111_v34  ;;  %v159_v51 = vsub.f32 %v157_v38, %v158_v39  ;;  %v205_v53 = vsub.f32 %v203_v41, %v204_v42 }
  0x32   :  { %v174_v38 = vld [vmem:[#allocation2 + $0x1] sm:$0x1]  ;;  %v220_v39 = vld [vmem:[#allocation2 + $0x2] sm:$0x1] }
  0x35   :  { %v276_v20 = vpop.eup %275 }
  0x36   :  { %v278_v21 = vpop.eup %277  ;;  %v117_v24 = vadd.f32 1.0, %v276_v20  ;;  %v120_v28 = vmul.f32 -0.5, %v276_v20  ;;  %v123_v35 = vand.u32 2147483647, %v276_v20 }
  0x37   :  { %v280_v25 = vpop.eup %279  ;;  %v164_v26 = vadd.f32 1.0, %v278_v21  ;;  %v167_v30 = vmul.f32 -0.5, %v278_v21  ;;  %v170_v40 = vand.u32 2147483647, %v278_v21 }
  0x38   :  { %281 = vlog2.f32 %v117_v24  ;;  %v210_v27 = vadd.f32 1.0, %v280_v25  ;;  %v213_v31 = vmul.f32 -0.5, %v280_v25  ;;  %v121_v32 = vadd.f32 1.0, %v120_v28 }
  0x39   :  { %283 = vlog2.f32 %v164_v26  ;;  %v168_v36 = vadd.f32 1.0, %v167_v30  ;;  %v216_v43 = vand.u32 2147483647, %v280_v25  ;;  %vm124_vm0 = vcmp.lt.f32.partialorder %v123_v35, 0.0004427343 }
  0x3a   :  { %285 = vlog2.f32 %v210_v27  ;;  %v214_v37 = vadd.f32 1.0, %v213_v31  ;;  %v122_v44 = vmul.f32 %v276_v20, %v121_v32  ;;  %vm171_vm1 = vcmp.lt.f32.partialorder %v170_v40, 0.0004427343  ;;  %v127_v35 = vld [vmem:[#allocation2] sm:$0x1] }
  0x3b   :  { %v169_v47 = vmul.f32 %v278_v21, %v168_v36  ;;  %vm217_vm2 = vcmp.lt.f32.partialorder %v216_v43, 0.0004427343 }
  0x3c   :  { %v215_v50 = vmul.f32 %v280_v25, %v214_v37 }
  0x42   :  { %v282_v45 = vpop.eup %281 }
  0x43   :  { %v284_v48 = vpop.eup %283  ;;  %v119_v49 = vmul.f32 0.6931472, %v282_v45 }
  0x44   :  { %v286_v52 = vpop.eup %285  ;;  %v166_v54 = vmul.f32 0.6931472, %v284_v48 }
  0x45   :  { %v125_v55 = vsel %vm124_vm0, %v122_v44, %v119_v49  ;;  %v212_v56 = vmul.f32 0.6931472, %v286_v52 }
  0x46   :  { %v126_v57 = vadd.f32 %v125_v55, %v112_v46  ;;  %v172_v58 = vsel %vm171_vm1, %v169_v47, %v166_v54 }
  0x47   :  { %v218_v59 = vsel %vm217_vm2, %v215_v50, %v212_v56  ;;  %v173_v60 = vadd.f32 %v172_v58, %v159_v51 }
  0x48   :  { %v135_v61 = vrot.slane %v126_v57, %v108_v23  ;;  %v219_v62 = vadd.f32 %v218_v59, %v205_v53 }
  0x49   :  { %v182_v63 = vrot.slane %v173_v60, %v108_v23 }
  0x4a   :  { %v136_v0 = vcombine.high %v135_v61, %v135_v61  ;;  %v140_v1 = vsel %vm139_vm3, %v135_v61, 0.0  ;;  %v228_v2 = vrot.slane %v219_v62, %v108_v23 }
  0x4b   :  { %v183_v3 = vcombine.high %v182_v63, %v182_v63  ;;  %v186_v7 = vsel %vm139_vm3, %v182_v63, 0.0 }
  0x4c   :  { %v141_v4 = vsel %vm139_vm3, %v136_v0, 0.0  ;;  %v229_v5 = vcombine.high %v228_v2, %v228_v2  ;;  %v232_v6 = vsel %vm139_vm3, %v228_v2, 0.0 }
  0x4d   :  { %v142_v8 = vadd.f32 %v141_v4, %v140_v1  ;;  %v187_v9 = vsel %vm139_vm3, %v183_v3, 0.0 }
  0x4e   :  { %v233_v10 = vsel %vm139_vm3, %v229_v5, 0.0  ;;  %v188_v12 = vadd.f32 %v187_v9, %v186_v7 }
  0x4f   :  { %143 = vadd.xlane.f32.xlu0 %v142_v8  ;;  %v234_v11 = vadd.f32 %v233_v10, %v232_v6 }
  0x51   :  { %235 = vadd.xlane.f32.xlu1 %v234_v11 }
  0x53   :  { %189 = vadd.xlane.f32.xlu0 %v188_v12 }
  0xdc   :  { %v144_v14 = vpop.xlane.xlu0 %143 }
  0xdd   :  { %v145_v15 = vrot.slane %v144_v14, 4 }
  0xde   :  { %v236_v16 = vpop.xlane.xlu1 %235 }
  0xdf   :  { %v146_v17 = vadd.f32 %v145_v15, %v144_v14  ;;  %v237_v18 = vrot.slane %v236_v16, 4 }
  0xe0   :  { %v190_v19 = vpop.xlane.xlu0 %189 }
  0xe1   :  { %v147_v20 = vrot.slane %v146_v17, 2  ;;  %v238_v21 = vadd.f32 %v237_v18, %v236_v16  ;;  %v191_v22 = vrot.slane %v190_v19, 4 }
  0xe3   :  { %v239_v23 = vrot.slane %v238_v21, 2  ;;  %v192_v24 = vadd.f32 %v191_v22, %v190_v19  ;;  %v148_v25 = vadd.f32 %v147_v20, %v146_v17 }
  0xe5   :  { %v240_v26 = vadd.f32 %v239_v23, %v238_v21  ;;  %v193_v27 = vrot.slane %v192_v24, 2  ;;  %v149_v28 = vrot.slane %v148_v25, 1 }
  0xe7   :  { %v194_v29 = vadd.f32 %v193_v27, %v192_v24  ;;  %v150_v30 = vadd.f32 %v149_v28, %v148_v25  ;;  %v241_v31 = vrot.slane %v240_v26, 1 }
  0xe9   :  { %265 = vpush %v150_v30  ;;  %v195_v32 = vrot.slane %v194_v29, 1  ;;  %v242_v34 = vadd.f32 %v241_v31, %v240_v26 }
  0xeb   :  { %v196_v33 = vadd.f32 %v195_v32, %v194_v29 }
  0xed   :  { %267 = vpush %v196_v33 }
  0xee   :  { %269 = vpush %v242_v34 }
 0x11a   :  { %s266_s2 = spop %265 }
 0x11b   :  { %v152_v36 = vstv %s266_s2 }
 0x11c   :  { %v153_v37 = vadd.f32 %v152_v36, %v127_v35 }
 0x11e   :  { %155 = vst.msk [vmem:[#allocation2] sm:$0x1] %vm154_vm5, %v153_v37  ;;  %s268_s3 = spop %267 }
 0x11f   :  { %v198_v40 = vstv %s268_s3  ;;  %s270_s15 = spop %269 }
 0x120   :  { %v199_v41 = vadd.f32 %v198_v40, %v174_v38  ;;  %v244_v42 = vstv %s270_s15 }
 0x121   :  { %v245_v43 = vadd.f32 %v244_v42, %v220_v39 }
 0x122   :  { %200 = vst.msk [vmem:[#allocation2 + $0x1] sm:$0x1] %vm154_vm5, %v199_v41 }
 0x123   :  { %246 = vst.msk [vmem:[#allocation2 + $0x2] sm:$0x1] %vm154_vm5, %v245_v43 }
 0x12a   :  { %v250_v44 = vld [vmem:[#allocation2] sm:$0x7] }
 0x12b   :  { %252 = vst.msk [vmem:[%s409_s4] sm:$0x7] %vm95_vm4, %v250_v44 }
 0x12c   :  { %257 = vsyncpa [#allocation4], 1 }
 0x12d   :  { %258 = vsyncpa [#allocation6], 1 }

</bundles_post_ra>
